<compile_context>
chip_gen: v6e
topology: v6e:2x2x1
jax: 0.10.0
libtpu: 0.0.40
codegen_flags: <defaults>
</compile_context>

<pallas_src>
import functools

import jax
import jax.numpy as jnp
from jax.experimental import pallas as pl
from jax.experimental.pallas import tpu as pltpu


def _ese_kernel(x_ref, w_ref, b_ref, o_ref, *, add_maxpool):
    # x_ref: (Nb, C, HW) in the input dtype (HW flattened onto the lane axis)
    # w_ref: (Cin, Cout) f32     b_ref: (1, Cout) f32     o_ref: (Nb, C, HW)
    x = x_ref[...]

    # Global average pool over spatial positions, f32 accumulation (lane reduce).
    se = jnp.mean(x.astype(jnp.float32), axis=-1)                     # (Nb, C)
    if add_maxpool:
        se = 0.5 * se + 0.5 * jnp.max(x, axis=-1).astype(jnp.float32)

    # 1x1 conv == (Nb, Cin) @ (Cin, Cout) + bias on the MXU.
    fc = jnp.dot(se, w_ref[...], preferred_element_type=jnp.float32) + b_ref[...]

    # hard_sigmoid gate: relu6(fc + 3) / 6
    gate = jnp.clip(fc + 3.0, 0.0, 6.0) * (1.0 / 6.0)                 # (Nb, C) f32

    # Apply the gate in the input dtype (no f32 copy of the x tile), broadcasting
    # the per-(sample, channel) scalar across the lane (HW) axis.
    o_ref[...] = x * gate.astype(o_ref.dtype)[:, :, None]


def effective_se_module(x_nchw, weight, bias, add_maxpool=False):
    """EffectiveSEModule forward.

    x_nchw: (N, C, H, W);  weight: (Cout, Cin, 1, 1);  bias: (Cout,).
    """
    N, C, H, W = x_nchw.shape
    HW = H * W
    itemsize = jnp.dtype(x_nchw.dtype).itemsize

    # NCHW -> (N, C, HW): free reshape, no transpose, no extra HBM traffic.
    x = x_nchw.reshape(N, C, HW)
    w_t = jnp.transpose(weight[:, :, 0, 0], (1, 0)).astype(jnp.float32)   # (Cin, Cout)
    b = bias.reshape(1, C).astype(jnp.float32)

    # Batch Nb samples per grid step so each tile is ~2 MiB (amortizes ~0.35us/step
    # pipeline overhead and fills MXU rows).
    target_tile_bytes = 2 * 1024 * 1024
    per_sample_bytes = C * HW * itemsize
    nb = 1
    for cand in range(1, N + 1):
        if N % cand == 0 and cand * per_sample_bytes <= target_tile_bytes:
            nb = cand
    # TODO(synk): if a single (C, HW) slab ever exceeds the VMEM budget (huge HW*C),
    # split HW into an "arbitrary" grid axis (partial-sum pass + gating pass).

    # Explicit VMEM budget: double-buffered in/out tiles + weight/bias + headroom.
    tile_bytes = nb * per_sample_bytes
    vmem_needed = 4 * tile_bytes + 2 * (C * C + C) * 4 + (1 << 20)
    cp_kwargs = dict(dimension_semantics=("parallel",))
    if vmem_needed > (32 << 20):
        cp_kwargs["vmem_limit_bytes"] = min(int(vmem_needed), 100 << 20)

    cost = pl.CostEstimate(
        flops=2 * N * C * C + 4 * N * HW * C,
        transcendentals=0,
        bytes_accessed=2 * N * HW * C * itemsize + (C * C + C) * 4,
    )

    out = pl.pallas_call(
        functools.partial(_ese_kernel, add_maxpool=add_maxpool),
        out_shape=jax.ShapeDtypeStruct((N, C, HW), x.dtype),
        grid_spec=pltpu.PrefetchScalarGridSpec(
            num_scalar_prefetch=0,
            grid=(N // nb,),
            in_specs=[
                pl.BlockSpec((nb, C, HW), lambda n: (n, 0, 0)),
                pl.BlockSpec((C, C), lambda n: (0, 0)),
                pl.BlockSpec((1, C), lambda n: (0, 0)),
            ],
            out_specs=pl.BlockSpec((nb, C, HW), lambda n: (n, 0, 0)),
        ),
        compiler_params=pltpu.CompilerParams(**cp_kwargs),
        cost_estimate=cost,
    )(x, w_t, b)

    # (N, C, HW) -> NCHW: free reshape.
    return out.reshape(N, C, H, W)


def _reference(x_nchw, weight, bias, add_maxpool=False):
    x_se = jnp.mean(x_nchw, axis=(2, 3), keepdims=True)               # (N, C, 1, 1)
    if add_maxpool:
        x_se = 0.5 * x_se + 0.5 * jnp.max(x_nchw, axis=(2, 3), keepdims=True)
    w = weight[:, :, 0, 0]                                            # (Cout, Cin)
    fc = jnp.einsum("ncij,oc->noij", x_se, w) + bias[None, :, None, None]
    gate = jnp.clip(fc + 3.0, 0.0, 6.0) / 6.0
    return x_nchw * gate


if __name__ == "__main__":
    key = jax.random.PRNGKey(0)
    k_x, k_w, k_b = jax.random.split(key, 3)

    # Small shapes; HW = 256 keeps the output lane-dense (multiple of 128).
    N, C, H, W = 2, 128, 16, 16
    x = jax.random.normal(k_x, (N, C, H, W), dtype=jnp.float32)
    # deterministic synthetic conv params (weight shape (C, C, 1, 1))
    fan_in = C
    limit = 1.0 / (fan_in ** 0.5)
    weight = jax.random.uniform(k_w, (C, C, 1, 1), jnp.float32, -limit, limit)
    bias = jax.random.uniform(k_b, (C,), jnp.float32, -limit, limit)

    out = jax.block_until_ready(effective_se_module(x, weight, bias))
    ref = _reference(x, weight, bias)
    assert out.shape == (N, C, H, W)
    assert jnp.allclose(out, ref, atol=1e-5, rtol=1e-5), "mismatch vs reference"

    # add_maxpool branch (0.5*mean + 0.5*amax) is also implemented in-kernel.
    out_mp = jax.block_until_ready(
        effective_se_module(x, weight, bias, add_maxpool=True))
    ref_mp = _reference(x, weight, bias, add_maxpool=True)
    assert jnp.allclose(out_mp, ref_mp, atol=1e-5, rtol=1e-5), "maxpool mismatch"

    print("KERNEL_OK")
</pallas_src>

<mosaic_0001>
module attributes {stable_mosaic.version = 11 : i64} {
  func.func @_ese_kernel(%arg0: i32, %arg1: memref<2x128x256xf32, #tpu.memory_space<vmem>>, %arg2: memref<128x128xf32, #tpu.memory_space<vmem>>, %arg3: memref<1x128xf32, #tpu.memory_space<vmem>>, %arg4: memref<2x128x256xf32, #tpu.memory_space<vmem>>) attributes {dimension_semantics = [#tpu.dimension_semantics<parallel>], iteration_bounds = array<i64: 1>, scalar_prefetch = 0 : i64, scratch_operands = 0 : i64, tpu.core_type = #tpu.core_type<tc>, window_params = [{transform_indices = @transform_0, window_bounds = array<i64: 2, 128, 256>}, {pipeline_mode = #tpu.pipeline_mode<synchronous>, transform_indices = @transform_1, window_bounds = array<i64: 128, 128>}, {pipeline_mode = #tpu.pipeline_mode<synchronous>, transform_indices = @transform_2, window_bounds = array<i64: 1, 128>}, {transform_indices = @transform_3, window_bounds = array<i64: 2, 128, 256>}]} {
    %c0 = arith.constant 0 : index
    %c0_0 = arith.constant 0 : index
    %c0_1 = arith.constant 0 : index
    %0 = vector.load %arg1[%c0, %c0_0, %c0_1] : memref<2x128x256xf32, #tpu.memory_space<vmem>>, vector<2x128x256xf32>
    %cst = arith.constant dense<0.000000e+00> : vector<2x128xf32>
    %1 = vector.multi_reduction <add>, %0, %cst [2] : vector<2x128x256xf32> to vector<2x128xf32>
    %cst_2 = arith.constant 2.560000e+02 : f32
    %2 = vector.broadcast %cst_2 : f32 to vector<2x128xf32>
    %3 = arith.divf %1, %2 : vector<2x128xf32>
    %c0_3 = arith.constant 0 : index
    %c0_4 = arith.constant 0 : index
    %4 = vector.load %arg2[%c0_3, %c0_4] : memref<128x128xf32, #tpu.memory_space<vmem>>, vector<128x128xf32>
    %cst_5 = arith.constant dense<0.000000e+00> : vector<2x128xf32>
    %5 = tpu.matmul %3, %4, %cst_5 {dimension_numbers = #tpu.dot_dimension_numbers<[1], [0], [0], [1], [0, 0, 1, 1], [], []>} : vector<2x128xf32>, vector<128x128xf32>, vector<2x128xf32> -> vector<2x128xf32>
    %c0_6 = arith.constant 0 : index
    %c0_7 = arith.constant 0 : index
    %6 = vector.load %arg3[%c0_6, %c0_7] : memref<1x128xf32, #tpu.memory_space<vmem>>, vector<1x128xf32>
    %7 = vector.broadcast %6 : vector<1x128xf32> to vector<2x128xf32>
    %8 = arith.addf %5, %7 : vector<2x128xf32>
    %cst_8 = arith.constant 3.000000e+00 : f32
    %9 = vector.broadcast %cst_8 : f32 to vector<2x128xf32>
    %10 = arith.addf %8, %9 : vector<2x128xf32>
    %cst_9 = arith.constant 0.000000e+00 : f32
    %cst_10 = arith.constant 6.000000e+00 : f32
    %11 = vector.broadcast %cst_9 : f32 to vector<2x128xf32>
    %12 = arith.maximumf %11, %10 : vector<2x128xf32>
    %13 = vector.broadcast %cst_10 : f32 to vector<2x128xf32>
    %14 = arith.minimumf %13, %12 : vector<2x128xf32>
    %cst_11 = arith.constant 0.166666672 : f32
    %15 = vector.broadcast %cst_11 : f32 to vector<2x128xf32>
    %16 = arith.mulf %14, %15 : vector<2x128xf32>
    %17 = vector.shape_cast %16 : vector<2x128xf32> to vector<2x128x1xf32>
    %18 = vector.broadcast %17 : vector<2x128x1xf32> to vector<2x128x256xf32>
    %19 = arith.mulf %0, %18 : vector<2x128x256xf32>
    %c0_12 = arith.constant 0 : index
    %c0_13 = arith.constant 0 : index
    %c0_14 = arith.constant 0 : index
    %20 = vector.load %arg4[%c0_12, %c0_13, %c0_14] : memref<2x128x256xf32, #tpu.memory_space<vmem>>, vector<2x128x256xf32>
    tpu.vector_store %arg4[%c0_12, %c0_13, %c0_14], %19 {strides = array<i32>} : memref<2x128x256xf32, #tpu.memory_space<vmem>>, vector<2x128x256xf32>,
    return
  }
  func.func @transform_0(%arg0: i32) -> (i32, i32, i32) {
    %c0_i32 = arith.constant 0 : i32
    %c0_i32_0 = arith.constant 0 : i32
    %c0_i32_1 = arith.constant 0 : i32
    return %arg0, %c0_i32, %c0_i32_0 : i32, i32, i32
  }
  func.func @transform_1(%arg0: i32) -> (i32, i32) {
    %c0_i32 = arith.constant 0 : i32
    %c0_i32_0 = arith.constant 0 : i32
    %c0_i32_1 = arith.constant 0 : i32
    return %c0_i32, %c0_i32_0 : i32, i32
  }
  func.func @transform_2(%arg0: i32) -> (i32, i32) {
    %c0_i32 = arith.constant 0 : i32
    %c0_i32_0 = arith.constant 0 : i32
    %c0_i32_1 = arith.constant 0 : i32
    return %c0_i32, %c0_i32_0 : i32, i32
  }
  func.func @transform_3(%arg0: i32) -> (i32, i32, i32) {
    %c0_i32 = arith.constant 0 : i32
    %c0_i32_0 = arith.constant 0 : i32
    %c0_i32_1 = arith.constant 0 : i32
    return %arg0, %c0_i32, %c0_i32_0 : i32, i32, i32
  }
}

</mosaic_0001>

<bundles_post_ra>
// kernel: tpu_custom_call.1
= control target key start
LH: loop header
LB: loop body
LE: loop exit
PB: predicated region body
PF: predicated region fallthrough
CT: control target
= control target key end

     0   :  { %8 = vsyncpa [#allocation3], 0  ;;  %s1421_s0 = inlined_call_operand.hbm [shape: f32[2,128,256], index: 0, kind: input, shape index: {}]   ;;  %s1422_s1 = inlined_call_operand.hbm [shape: f32[128,128], index: 1, kind: input, shape index: {}]   ;;  %s1423_s2 = inlined_call_operand.vmem [shape: f32[1,128], index: 2, kind: input, shape index: {}]   ;;  %s1424_s3 = inlined_call_operand.hbm [shape: f32[2,128,256], index: 3, kind: output, shape index: {}]  }
   0x1   :  { %9 = vsyncpa [#allocation6], 0 }
   0x2   :  { %10 = vsyncpa [#allocation4], 0  ;;  %s966_s12 = smov [#allocation2]  }
   0x3   :  { %s16_s13 = sshll.u32 %s966_s12, 4  ;;  %s17_s13 = int_to_ptr.vmem [resolvable:$true] %s16_s13 }
   0x4   :  { %s908_s14 = scalar_lea.vmem %s17_s13, 8192  ;;  %p913_p1 = scmp.lt.s32.totalorder %s17_s13, %s17_s13 }
   0x5   :  { %p909_p0 = scmp.ne.s32.totalorder %s17_s13, %s908_s14  ;;  %p914_p2 = scmp.lt.s32.totalorder %s908_s14, %s908_s14 }
   0x7   :  { %p915_p3 = por %p914_p2, %p913_p1 }
   0x9   :  { %p916_p4 = pnand %p915_p3, %p909_p0 }
   0xb   :  { %919 = shalt.err (!%p916_p4)
}
   0xc   :  { %s967_s15 = smov 256   ;;  %s968_s16 = smov 16  }
   0xd   :  { %22 = dma.hbm_to_vmem [thread:$0]  %s1421_s0, 8192, %s17_s13, [#allocation3], %s967_s15, %s967_s15, %s968_s16  }
   0xe   :  { %s969_s19 = smov [#allocation5]  }
   0xf   :  { %s28_s20 = sshll.u32 %s969_s19, 4  ;;  %s29_s20 = int_to_ptr.vmem [resolvable:$true] %s28_s20 }
  0x10   :  { %s928_s21 = scalar_lea.vmem %s29_s20, 2048  ;;  %p933_p6 = scmp.lt.s32.totalorder %s29_s20, %s29_s20 }
  0x11   :  { %p929_p5 = scmp.ne.s32.totalorder %s29_s20, %s928_s21  ;;  %p934_p7 = scmp.lt.s32.totalorder %s928_s21, %s928_s21 }
  0x13   :  { %p935_p8 = por %p934_p7, %p933_p6 }
  0x15   :  { %p936_p9 = pnand %p935_p8, %p929_p5 }
  0x17   :  { %939 = shalt.err (!%p936_p9)
}
  0x18   :  { %s970_s22 = smov 128   ;;  %s971_s23 = smov 8  }
  0x19   :  { %34 = dma.hbm_to_vmem [thread:$0]  %s1422_s1, 2048, %s29_s20, [#allocation6], %s970_s22, %s970_s22, %s971_s23  }
  0x1a   :  { %960 = dma.done.wait [#allocation3], 8192  }
  0x1b   :  { %961 = vsyncadd [#allocation3], 4294959104 }
  0x1c   :  { %962 = dma.done.wait [#allocation6], 2048  }
  0x1d   :  { %963 = vsyncadd [#allocation6], 4294965248  ;;  %v1004_v0 = vld [vmem:[#allocation2 + $0x100] sm:$0xff]  ;;  %v1006_v1 = vld [vmem:[#allocation2 + $0x108] sm:$0xff]  ;;  %vm973_vm0 = vmmov 0   ;;  %vm302_vm1 = vcmask 130112  }
  0x1e   :  { %1477 = vst [vmem:[#allocation11_spill] sm:$0xff] %v1004_v0  ;;  %1478 = vst [vmem:[#allocation12_spill] sm:$0xff] %v1006_v1  ;;  %v1008_v2 = vld [vmem:[#allocation2] sm:$0xff]  ;;  %v155_v3 = vadd.f32 %v1006_v1, %v1004_v0  ;;  %v1012_v4 = vld [vmem:[#allocation2 + $0x8] sm:$0xff]  ;;  %vm309_vm2 = vcmask 195712   ;;  %vm316_vm3 = vcmask 261312  }
  0x1f   :  { %v1014_v5 = vld [vmem:[#allocation2 + $0x110] sm:$0xff]  ;;  %v1016_v6 = vld [vmem:[#allocation2 + $0x118] sm:$0xff]  ;;  %v107_v7 = vadd.f32 %v1012_v4, %v1008_v2  ;;  %v1028_v12 = vld [vmem:[#allocation2 + $0x120] sm:$0xff]  ;;  %vm323_vm4 = vcmask 326912   ;;  %vm330_vm5 = vcmask 392512   ;;  %vm337_vm6 = vcmask 458112  }
  0x20   :  { %1479 = vst [vmem:[#allocation13_spill] sm:$0xff] %v1014_v5  ;;  %1480 = vst [vmem:[#allocation14_spill] sm:$0xff] %v1016_v6  ;;  %v1020_v8 = vld [vmem:[#allocation2 + $0x10] sm:$0xff]  ;;  %v1022_v9 = vld [vmem:[#allocation2 + $0x18] sm:$0xff]  ;;  %156 = vadd.xlane.f32.xlu1 %v155_v3  ;;  %v158_v10 = vadd.f32 %v1016_v6, %v1014_v5  ;;  %vm344_vm7 = vcmask 523712   ;;  %vm351_vm8 = vcmask 589312  }
  0x21   :  { %108 = vadd.xlane.f32.xlu0 %v107_v7  ;;  %v110_v11 = vadd.f32 %v1022_v9, %v1020_v8  ;;  %1481 = vst [vmem:[#allocation15_spill] sm:$0xff] %v1028_v12  ;;  %v1030_v13 = vld [vmem:[#allocation2 + $0x128] sm:$0xff]  ;;  %v1032_v14 = vld [vmem:[#allocation2 + $0x20] sm:$0xff]  ;;  %v1040_v18 = vld [vmem:[#allocation2 + $0x130] sm:$0xff]  ;;  %vm358_vm9 = vcmask 654912   ;;  %vm365_vm10 = vcmask 720512  }
  0x22   :  { %1482 = vst [vmem:[#allocation16_spill] sm:$0xff] %v1030_v13  ;;  %v1034_v15 = vld [vmem:[#allocation2 + $0x28] sm:$0xff]  ;;  %v161_v16 = vadd.f32 %v1030_v13, %v1028_v12  ;;  %1483 = vst [vmem:[#allocation17_spill] sm:$0xff] %v1040_v18  ;;  %v1042_v19 = vld [vmem:[#allocation2 + $0x138] sm:$0xff]  ;;  %vm372_vm11 = vcmask 786112   ;;  %vm379_vm12 = vcmask 851712  }
  0x23   :  { %v113_v17 = vadd.f32 %v1034_v15, %v1032_v14  ;;  %1484 = vst [vmem:[#allocation18_spill] sm:$0xff] %v1042_v19  ;;  %v1044_v20 = vld [vmem:[#allocation2 + $0x30] sm:$0xff]  ;;  %v1046_v21 = vld [vmem:[#allocation2 + $0x38] sm:$0xff]  ;;  %v164_v22 = vadd.f32 %v1042_v19, %v1040_v18  ;;  %v1052_v24 = vld [vmem:[#allocation2 + $0x140] sm:$0xff]  ;;  %vm386_vm13 = vcmask 917312   ;;  %vm393_vm14 = vcmask 982912  }
  0x24   :  { %159 = vadd.xlane.f32.xlu1 %v158_v10  ;;  %v116_v23 = vadd.f32 %v1046_v21, %v1044_v20  ;;  %1485 = vst [vmem:[#allocation19_spill] sm:$0xff] %v1052_v24  ;;  %v1054_v25 = vld [vmem:[#allocation2 + $0x148] sm:$0xff]  ;;  %v1056_v26 = vld [vmem:[#allocation2 + $0x40] sm:$0xff]  ;;  %v1064_v30 = vld [vmem:[#allocation2 + $0x150] sm:$0xff]  ;;  %vm400_vm15 = vcmask 1048512  }
  0x25   :  { %111 = vadd.xlane.f32.xlu0 %v110_v11  ;;  %1486 = vst [vmem:[#allocation20_spill] sm:$0xff] %v1054_v25  ;;  %v1058_v27 = vld [vmem:[#allocation2 + $0x48] sm:$0xff]  ;;  %v167_v28 = vadd.f32 %v1054_v25, %v1052_v24  ;;  %1487 = vst [vmem:[#allocation21_spill] sm:$0xff] %v1064_v30  ;;  %v1066_v31 = vld [vmem:[#allocation2 + $0x158] sm:$0xff] }
  0x26   :  { %v119_v29 = vadd.f32 %v1058_v27, %v1056_v26  ;;  %1488 = vst [vmem:[#allocation22_spill] sm:$0xff] %v1066_v31  ;;  %v1068_v32 = vld [vmem:[#allocation2 + $0x50] sm:$0xff]  ;;  %v1070_v33 = vld [vmem:[#allocation2 + $0x58] sm:$0xff]  ;;  %v170_v34 = vadd.f32 %v1066_v31, %v1064_v30  ;;  %v1076_v36 = vld [vmem:[#allocation2 + $0x160] sm:$0xff] }
  0x27   :  { %1489 = vst [vmem:[#allocation23_spill] sm:$0xff] %v1068_v32  ;;  %1490 = vst [vmem:[#allocation24_spill] sm:$0xff] %v1070_v33  ;;  %v122_v35 = vadd.f32 %v1070_v33, %v1068_v32  ;;  %v1078_v37 = vld [vmem:[#allocation2 + $0x168] sm:$0xff]  ;;  %v1080_v38 = vld [vmem:[#allocation2 + $0x60] sm:$0xff] }
  0x28   :  { %162 = vadd.xlane.f32.xlu1 %v161_v16  ;;  %1491 = vst [vmem:[#allocation25_spill] sm:$0xff] %v1076_v36  ;;  %1492 = vst [vmem:[#allocation26_spill] sm:$0xff] %v1078_v37  ;;  %v1082_v39 = vld [vmem:[#allocation2 + $0x68] sm:$0xff]  ;;  %v173_v40 = vadd.f32 %v1078_v37, %v1076_v36  ;;  %v1088_v42 = vld [vmem:[#allocation2 + $0x170] sm:$0xff] }
  0x29   :  { %114 = vadd.xlane.f32.xlu0 %v113_v17  ;;  %v125_v41 = vadd.f32 %v1082_v39, %v1080_v38  ;;  %1493 = vst [vmem:[#allocation27_spill] sm:$0xff] %v1088_v42  ;;  %v1090_v43 = vld [vmem:[#allocation2 + $0x178] sm:$0xff]  ;;  %v1092_v44 = vld [vmem:[#allocation2 + $0x70] sm:$0xff]  ;;  %v1100_v48 = vld [vmem:[#allocation2 + $0x180] sm:$0xff] }
  0x2a   :  { %1494 = vst [vmem:[#allocation28_spill] sm:$0xff] %v1090_v43  ;;  %1495 = vst [vmem:[#allocation29_spill] sm:$0xff] %v1092_v44  ;;  %v1094_v45 = vld [vmem:[#allocation2 + $0x78] sm:$0xff]  ;;  %v176_v46 = vadd.f32 %v1090_v43, %v1088_v42  ;;  %v1102_v49 = vld [vmem:[#allocation2 + $0x188] sm:$0xff] }
  0x2b   :  { %1496 = vst [vmem:[#allocation30_spill] sm:$0xff] %v1094_v45  ;;  %v128_v47 = vadd.f32 %v1094_v45, %v1092_v44  ;;  %1497 = vst [vmem:[#allocation31_spill] sm:$0xff] %v1100_v48  ;;  %v1104_v50 = vld [vmem:[#allocation2 + $0x80] sm:$0xff]  ;;  %v1106_v51 = vld [vmem:[#allocation2 + $0x88] sm:$0xff]  ;;  %v179_v52 = vadd.f32 %v1102_v49, %v1100_v48 }
  0x2c   :  { %165 = vadd.xlane.f32.xlu1 %v164_v22  ;;  %1498 = vst [vmem:[#allocation32_spill] sm:$0xff] %v1102_v49  ;;  %1499 = vst [vmem:[#allocation33_spill] sm:$0xff] %v1104_v50  ;;  %v131_v53 = vadd.f32 %v1106_v51, %v1104_v50  ;;  %v1112_v54 = vld [vmem:[#allocation2 + $0x190] sm:$0xff]  ;;  %v1114_v55 = vld [vmem:[#allocation2 + $0x198] sm:$0xff]  ;;  %v291_v49 = vlaneseq }
  0x2d   :  { %117 = vadd.xlane.f32.xlu0 %v116_v23  ;;  %1500 = vst [vmem:[#allocation34_spill] sm:$0xff] %v1106_v51  ;;  %1501 = vst [vmem:[#allocation35_spill] sm:$0xff] %v1112_v54  ;;  %v1116_v56 = vld [vmem:[#allocation2 + $0x90] sm:$0xff]  ;;  %v1118_v57 = vld [vmem:[#allocation2 + $0x98] sm:$0xff]  ;;  %v182_v58 = vadd.f32 %v1114_v55, %v1112_v54 }
  0x2e   :  { %1502 = vst [vmem:[#allocation36_spill] sm:$0xff] %v1114_v55  ;;  %1503 = vst [vmem:[#allocation37_spill] sm:$0xff] %v1116_v56  ;;  %v134_v59 = vadd.f32 %v1118_v57, %v1116_v56  ;;  %v1124_v60 = vld [vmem:[#allocation2 + $0x1a0] sm:$0xff]  ;;  %v1126_v61 = vld [vmem:[#allocation2 + $0x1a8] sm:$0xff]  ;;  %v292_v48 = vand.u32 127, %v291_v49  ;;  %v1223_v31 = vshrl.u32 %v291_v49, 7 }
  0x2f   :  { %1504 = vst [vmem:[#allocation38_spill] sm:$0xff] %v1118_v57  ;;  %1505 = vst [vmem:[#allocation39_spill] sm:$0xff] %v1124_v60  ;;  %v1128_v62 = vld [vmem:[#allocation2 + $0xa0] sm:$0xff]  ;;  %v1130_v63 = vld [vmem:[#allocation2 + $0xa8] sm:$0xff]  ;;  %v185_v3 = vadd.f32 %v1126_v61, %v1124_v60 }
  0x30   :  { %168 = vadd.xlane.f32.xlu1 %v167_v28  ;;  %1506 = vst [vmem:[#allocation40_spill] sm:$0xff] %v1126_v61  ;;  %1507 = vst [vmem:[#allocation41_spill] sm:$0xff] %v1128_v62  ;;  %v137_v7 = vadd.f32 %v1130_v63, %v1128_v62  ;;  %v1136_v10 = vld [vmem:[#allocation2 + $0x1b0] sm:$0xff]  ;;  %v1138_v11 = vld [vmem:[#allocation2 + $0x1b8] sm:$0xff]  ;;  %v297_v30 = vadd.s32 4294967288, %v292_v48  ;;  %v304_v37 = vadd.s32 4294967280, %v292_v48  ;;  %v1230_v13 = vsub.s32 %v292_v48, %v1223_v31 }
  0x31   :  { %120 = vadd.xlane.f32.xlu0 %v119_v29  ;;  %1508 = vst [vmem:[#allocation42_spill] sm:$0xff] %v1130_v63  ;;  %1509 = vst [vmem:[#allocation43_spill] sm:$0xff] %v1136_v10  ;;  %v1140_v16 = vld [vmem:[#allocation2 + $0xb0] sm:$0xff]  ;;  %v1142_v17 = vld [vmem:[#allocation2 + $0xb8] sm:$0xff]  ;;  %v188_v22 = vadd.f32 %v1138_v11, %v1136_v10  ;;  %v311_v19 = vadd.s32 4294967272, %v292_v48  ;;  %v318_v18 = vadd.s32 4294967264, %v292_v48 }
  0x32   :  { %1510 = vst [vmem:[#allocation44_spill] sm:$0xff] %v1138_v11  ;;  %1511 = vst [vmem:[#allocation45_spill] sm:$0xff] %v1140_v16  ;;  %v140_v23 = vadd.f32 %v1142_v17, %v1140_v16  ;;  %v1148_v28 = vld [vmem:[#allocation2 + $0x1c0] sm:$0xff]  ;;  %v1150_v29 = vld [vmem:[#allocation2 + $0x1c8] sm:$0xff]  ;;  %v325_v24 = vadd.s32 4294967256, %v292_v48  ;;  %v332_v6 = vadd.s32 4294967248, %v292_v48  ;;  %v300_v49 = vsub.s32 %v297_v30, %v1223_v31 }
  0x33   :  { %1512 = vst [vmem:[#allocation46_spill] sm:$0xff] %v1142_v17  ;;  %1513 = vst [vmem:[#allocation47_spill] sm:$0xff] %v1148_v28  ;;  %v1176_v11 = vld [vmem:[#allocation2 + $0x1e8] sm:$0xff]  ;;  %v1195_v55 = vld [vmem:[#allocation2 + $0xf8] sm:$0xff]  ;;  %v339_v5 = vadd.s32 4294967240, %v292_v48  ;;  %v346_v12 = vadd.s32 4294967232, %v292_v48  ;;  %v1234_v1 = vsub.s32 %v304_v37, %v1223_v31 }
  0x34   :  { %171 = vadd.xlane.f32.xlu1 %v170_v34  ;;  %1514 = vst [vmem:[#allocation48_spill] sm:$0xff] %v1150_v29  ;;  %v1152_v34 = vld [vmem:[#allocation2 + $0xc0] sm:$0xff]  ;;  %1522 = vst [vmem:[#allocation56_spill] sm:$0xff] %v1176_v11  ;;  %v249_v10 = vld [vmem:[#allocation5 + $0x68] sm:$0xff]  ;;  %v374_v17 = vadd.s32 4294967200, %v292_v48  ;;  %v1247_v30 = vsub.s32 %v325_v24, %v1223_v31  ;;  %v1250_v37 = vsub.s32 %v332_v6, %v1223_v31 }
  0x35   :  { %123 = vadd.xlane.f32.xlu0 %v122_v35  ;;  %1515 = vst [vmem:[#allocation49_spill] sm:$0xff] %v1152_v34  ;;  %v1154_v35 = vld [vmem:[#allocation2 + $0xc8] sm:$0xff]  ;;  %1528 = vst [vmem:[#allocation62_spill] sm:$0xff] %v1195_v55  ;;  %v1253_v16 = vsub.s32 %v339_v5, %v1223_v31  ;;  %v388_v5 = vadd.s32 4294967184, %v292_v48 }
  0x36   :  { %1516 = vst [vmem:[#allocation50_spill] sm:$0xff] %v1154_v35 }
  0x38   :  { %174 = vadd.xlane.f32.xlu1 %v173_v40  ;;  %v191_v40 = vadd.f32 %v1150_v29, %v1148_v28  ;;  %v1181_v29 = vld [vmem:[#allocation2 + $0xe8] sm:$0xff]  ;;  %v247_v28 = vld [vmem:[#allocation5 + $0x58] sm:$0xff] }
  0x39   :  { %126 = vadd.xlane.f32.xlu0 %v125_v41  ;;  %v143_v41 = vadd.f32 %v1154_v35, %v1152_v34  ;;  %1524 = vst [vmem:[#allocation58_spill] sm:$0xff] %v1181_v29  ;;  %v381_v35 = vadd.s32 4294967192, %v292_v48 }
  0x3c   :  { %177 = vadd.xlane.f32.xlu1 %v176_v46  ;;  %v1160_v46 = vld [vmem:[#allocation2 + $0x1d0] sm:$0xff] }
  0x3d   :  { %129 = vadd.xlane.f32.xlu0 %v128_v47  ;;  %1517 = vst [vmem:[#allocation51_spill] sm:$0xff] %v1160_v46  ;;  %v1162_v47 = vld [vmem:[#allocation2 + $0x1d8] sm:$0xff] }
  0x3e   :  { %1518 = vst [vmem:[#allocation52_spill] sm:$0xff] %v1162_v47 }
  0x40   :  { %180 = vadd.xlane.f32.xlu1 %v179_v52  ;;  %v972_v52 = vmov 0.0  }
  0x41   :  { %132 = vadd.xlane.f32.xlu0 %v131_v53  ;;  %856 = vmatprep.subr.mxu0 %v972_v52  ;;  %v251_v53 = vld [vmem:[#allocation5 + $0x78] sm:$0xff] }
  0x42   :  { %857 = vmatpush3.msra.mxu0 %v251_v53  ;;  %v1179_v53 = vld [vmem:[#allocation2 + $0xe0] sm:$0xff]  ;;  %888 = vmatprep.mubr.msk.f32.mxu0 %vm973_vm0, %v972_v52  ;;  %vm481_vm0 = vcmask 1041409  }
  0x43   :  { %858 = vmatprep.subr.mxu0 %v972_v52  ;;  %1523 = vst [vmem:[#allocation57_spill] sm:$0xff] %v1179_v53 }
  0x44   :  { %183 = vadd.xlane.f32.xlu1 %v182_v58  ;;  %v1165_v58 = vld [vmem:[#allocation2 + $0xd0] sm:$0xff] }
  0x45   :  { %135 = vadd.xlane.f32.xlu0 %v134_v59  ;;  %1519 = vst [vmem:[#allocation53_spill] sm:$0xff] %v1165_v58  ;;  %v1167_v59 = vld [vmem:[#allocation2 + $0xd8] sm:$0xff] }
  0x46   :  { %1520 = vst [vmem:[#allocation54_spill] sm:$0xff] %v1167_v59 }
  0x48   :  { %186 = vadd.xlane.f32.xlu1 %v185_v3  ;;  %v250_v3 = vld [vmem:[#allocation5 + $0x70] sm:$0xff] }
  0x49   :  { %138 = vadd.xlane.f32.xlu0 %v137_v7  ;;  %v194_v7 = vadd.f32 %v1162_v47, %v1160_v46  ;;  %859 = vmatpush3.msra.mxu0 %v250_v3  ;;  %v149_v3 = vadd.f32 %v1181_v29, %v1179_v53  ;;  %v1188_v47 = vld [vmem:[#allocation2 + $0x1f0] sm:$0xff]  ;;  %v1190_v46 = vld [vmem:[#allocation2 + $0x1f8] sm:$0xff]  ;;  %v1242_v29 = vsub.s32 %v318_v18, %v1223_v31 }
  0x4a   :  { %860 = vmatprep.subr.mxu0 %v972_v52  ;;  %1525 = vst [vmem:[#allocation59_spill] sm:$0xff] %v1188_v47  ;;  %1526 = vst [vmem:[#allocation60_spill] sm:$0xff] %v1190_v46 }
  0x4b   :  { %861 = vmatpush3.msra.mxu0 %v249_v10  ;;  %v1193_v10 = vld [vmem:[#allocation2 + $0xf0] sm:$0xff] }
  0x4c   :  { %189 = vadd.xlane.f32.xlu1 %v188_v22  ;;  %v146_v22 = vadd.f32 %v1167_v59, %v1165_v58  ;;  %862 = vmatprep.subr.mxu0 %v972_v52  ;;  %1527 = vst [vmem:[#allocation61_spill] sm:$0xff] %v1193_v10  ;;  %v367_v59 = vadd.s32 4294967208, %v292_v48  ;;  %v1239_v58 = vsub.s32 %v311_v19, %v1223_v31 }
  0x4d   :  { %141 = vadd.xlane.f32.xlu0 %v140_v23  ;;  %v1174_v23 = vld [vmem:[#allocation2 + $0x1e0] sm:$0xff]  ;;  %v1256_v19 = vsub.s32 %v346_v12, %v1223_v31  ;;  %v1268_v12 = vsub.s32 %v374_v17, %v1223_v31  ;;  %v1276_v17 = vsub.s32 %v388_v5, %v1223_v31 }
  0x4e   :  { %1521 = vst [vmem:[#allocation55_spill] sm:$0xff] %v1174_v23  ;;  %v1265_v63 = vsub.s32 %v367_v59, %v1223_v31  ;;  %v395_v59 = vadd.s32 4294967176, %v292_v48 }
  0x50   :  { %192 = vadd.xlane.f32.xlu1 %v191_v40  ;;  %v248_v40 = vld [vmem:[#allocation5 + $0x60] sm:$0xff] }
  0x51   :  { %144 = vadd.xlane.f32.xlu0 %v143_v41  ;;  %v197_v41 = vadd.f32 %v1176_v11, %v1174_v23  ;;  %863 = vmatpush3.msra.mxu0 %v248_v40  ;;  %v152_v40 = vadd.f32 %v1195_v55, %v1193_v10  ;;  %v245_v11 = vld [vmem:[#allocation5 + $0x48] sm:$0xff]  ;;  %v244_v23 = vld [vmem:[#allocation5 + $0x40] sm:$0xff]  ;;  %v353_v55 = vadd.s32 4294967224, %v292_v48  ;;  %v360_v10 = vadd.s32 4294967216, %v292_v48 }
  0x52   :  { %864 = vmatprep.subr.mxu0 %v972_v52 }
  0x53   :  { %865 = vmatpush3.msra.mxu0 %v247_v28  ;;  %v243_v28 = vld [vmem:[#allocation5 + $0x38] sm:$0xff]  ;;  %v1259_v18 = vsub.s32 %v353_v55, %v1223_v31  ;;  %v1262_v57 = vsub.s32 %v360_v10, %v1223_v31  ;;  %v1271_v10 = vsub.s32 %v381_v35, %v1223_v31 }
  0x54   :  { %195 = vadd.xlane.f32.xlu1 %v194_v7  ;;  %866 = vmatprep.subr.mxu0 %v972_v52  ;;  %v246_v7 = vld [vmem:[#allocation5 + $0x50] sm:$0xff] }
  0x55   :  { %147 = vadd.xlane.f32.xlu0 %v146_v22  ;;  %v200_v22 = vadd.f32 %v1190_v46, %v1188_v47  ;;  %867 = vmatpush3.msra.mxu0 %v246_v7  ;;  %v238_v7 = vld [vmem:[#allocation5 + $0x10] sm:$0xff] }
  0x56   :  { %868 = vmatprep.subr.mxu0 %v972_v52 }
  0x57   :  { %869 = vmatpush3.msra.mxu0 %v245_v11  ;;  %v240_v11 = vld [vmem:[#allocation5 + $0x20] sm:$0xff] }
  0x58   :  { %198 = vadd.xlane.f32.xlu1 %v197_v41  ;;  %870 = vmatprep.subr.mxu0 %v972_v52  ;;  %v242_v41 = vld [vmem:[#allocation5 + $0x30] sm:$0xff] }
  0x59   :  { %150 = vadd.xlane.f32.xlu0 %v149_v3  ;;  %871 = vmatpush3.msra.mxu0 %v244_v23  ;;  %v241_v3 = vld [vmem:[#allocation5 + $0x28] sm:$0xff]  ;;  %v239_v23 = vld [vmem:[#allocation5 + $0x18] sm:$0xff] }
  0x5a   :  { %872 = vmatprep.subr.mxu0 %v972_v52 }
  0x5b   :  { %873 = vmatpush3.msra.mxu0 %v243_v28 }
  0x5c   :  { %201 = vadd.xlane.f32.xlu1 %v200_v22  ;;  %874 = vmatprep.subr.mxu0 %v972_v52  ;;  %v237_v22 = vld [vmem:[#allocation5 + $0x8] sm:$0xff] }
  0x5d   :  { %153 = vadd.xlane.f32.xlu0 %v152_v40  ;;  %875 = vmatpush3.msra.mxu0 %v242_v41  ;;  %v236_v40 = vld [vmem:[#allocation5] sm:$0xff] }
  0x5e   :  { %876 = vmatprep.subr.mxu0 %v972_v52 }
  0x5f   :  { %877 = vmatpush3.msra.mxu0 %v241_v3 }
  0x60   :  { %878 = vmatprep.subr.mxu0 %v972_v52 }
  0x61   :  { %879 = vmatpush3.msra.mxu0 %v240_v11 }
  0x62   :  { %880 = vmatprep.subr.mxu0 %v972_v52 }
  0x63   :  { %881 = vmatpush3.msra.mxu0 %v239_v23 }
  0x64   :  { %882 = vmatprep.subr.mxu0 %v972_v52 }
  0x65   :  { %883 = vmatpush3.msra.mxu0 %v238_v7 }
  0x66   :  { %884 = vmatprep.subr.mxu0 %v972_v52 }
  0x67   :  { %885 = vmatpush3.msra.mxu0 %v237_v22 }
  0x68   :  { %886 = vmatprep.subr.mxu0 %v972_v52 }
  0x69   :  { %887 = vmatpush3.msra.mxu0 %v236_v40 }
  0xa9   :  { %v157_v28 = vpop.xlane.xlu1 %156 }
  0xaa   :  { %v109_v41 = vpop.xlane.xlu0 %108  ;;  %v220_v62 = vmul.f32 0.00390625, %v157_v28 }
  0xab   :  { %v204_v55 = vmul.f32 0.00390625, %v109_v41 }
  0xad   :  { %v160_v3 = vpop.xlane.xlu1 %159  ;;  %v296_v48 = vrot.slane %v204_v55, %v1230_v13 }
  0xae   :  { %v112_v11 = vpop.xlane.xlu0 %111  ;;  %v221_v34 = vmul.f32 0.00390625, %v160_v3 }
  0xaf   :  { %v205_v24 = vmul.f32 0.00390625, %v112_v11 }
  0xb0   :  { %v409_v11 = vrot.slane %v221_v34, %v300_v49 }
  0xb1   :  { %v163_v23 = vpop.xlane.xlu1 %162  ;;  %v301_v32 = vrot.slane %v205_v24, %v300_v49 }
  0xb2   :  { %v115_v46 = vpop.xlane.xlu0 %114  ;;  %v222_v56 = vmul.f32 0.00390625, %v163_v23 }
  0xb3   :  { %v206_v3 = vmul.f32 0.00390625, %v115_v46 }
  0xb4   :  { %v414_v28 = vrot.slane %v222_v56, %v1234_v1 }
  0xb5   :  { %v166_v47 = vpop.xlane.xlu1 %165  ;;  %v308_v41 = vrot.slane %v206_v3, %v1234_v1 }
  0xb6   :  { %v118_v54 = vpop.xlane.xlu0 %117  ;;  %v223_v45 = vmul.f32 0.00390625, %v166_v47 }
  0xb7   :  { %v207_v51 = vmul.f32 0.00390625, %v118_v54  ;;  %v405_v54 = vrot.slane %v220_v62, %v1230_v13 }
  0xb8   :  { %v419_v35 = vrot.slane %v223_v45, %v1239_v58  ;;  %v1290_v45 = vsub.s32 %v395_v59, %v1223_v31 }
  0xb9   :  { %v169_v7 = vpop.xlane.xlu1 %168  ;;  %v315_v56 = vrot.slane %v207_v51, %v1239_v58 }
  0xba   :  { %v121_v61 = vpop.xlane.xlu0 %120  ;;  %v224_v50 = vmul.f32 0.00390625, %v169_v7  ;;  %v410_v7 = vsel %vm302_vm1, %v409_v11, %v405_v54 }
  0xbb   :  { %v208_v23 = vmul.f32 0.00390625, %v121_v61  ;;  %v415_v13 = vsel %vm309_vm2, %v414_v28, %v410_v7 }
  0xbd   :  { %v172_v60 = vpop.xlane.xlu1 %171  ;;  %v322_v62 = vrot.slane %v208_v23, %v1242_v29 }
  0xbe   :  { %v1213_v43 = vpop.xlane.xlu0 %123  ;;  %v225_v33 = vmul.f32 0.00390625, %v172_v60 }
  0xbf   :  { %v209_v46 = vmul.f32 0.00390625, %v1213_v43  ;;  %v424_v43 = vrot.slane %v224_v50, %v1242_v29  ;;  %v420_v29 = vsel %vm316_vm3, %v419_v35, %v415_v13 }
  0xc0   :  { %v429_v1 = vrot.slane %v225_v33, %v1247_v30 }
  0xc1   :  { %v1215_v22 = vpop.xlane.xlu1 %174  ;;  %v329_v51 = vrot.slane %v209_v46, %v1247_v30  ;;  %v425_v5 = vsel %vm323_vm4, %v424_v43, %v420_v29 }
  0xc2   :  { %v1217_v42 = vpop.xlane.xlu0 %126  ;;  %v226_v34 = vmul.f32 0.00390625, %v1215_v22  ;;  %v303_v22 = vsel %vm302_vm1, %v301_v32, %v296_v48  ;;  %v430_v55 = vsel %vm330_vm5, %v429_v1, %v425_v5 }
  0xc3   :  { %v210_v61 = vmul.f32 0.00390625, %v1217_v42  ;;  %v310_v58 = vsel %vm309_vm2, %v308_v41, %v303_v22 }
  0xc4   :  { %v434_v33 = vrot.slane %v226_v34, %v1250_v37  ;;  %v317_v32 = vsel %vm316_vm3, %v315_v56, %v310_v58 }
  0xc5   :  { %v1219_v52 = vpop.xlane.xlu1 %177  ;;  %v336_v30 = vrot.slane %v210_v61, %v1250_v37  ;;  %v324_v3 = vsel %vm323_vm4, %v322_v62, %v317_v32 }
  0xc6   :  { %v1221_v40 = vpop.xlane.xlu0 %129  ;;  %v227_v50 = vmul.f32 0.00390625, %v1219_v52 }
  0xc7   :  { %v211_v49 = vmul.f32 0.00390625, %v1221_v40  ;;  %v331_v40 = vsel %vm330_vm5, %v329_v51, %v324_v3 }
  0xc8   :  { %v439_v59 = vrot.slane %v227_v50, %v1253_v16 }
  0xc9   :  { %v1225_v36 = vpop.xlane.xlu1 %180  ;;  %v343_v54 = vrot.slane %v211_v49, %v1253_v16 }
  0xca   :  { %v1227_v25 = vpop.xlane.xlu0 %132  ;;  %v228_v52 = vmul.f32 0.00390625, %v1225_v36  ;;  %v435_v36 = vsel %vm337_vm6, %v434_v33, %v430_v55 }
  0xcb   :  { %v212_v11 = vmul.f32 0.00390625, %v1227_v25  ;;  %v440_v7 = vsel %vm344_vm7, %v439_v59, %v435_v36 }
  0xcc   :  { %v444_v25 = vrot.slane %v228_v52, %v1256_v19 }
  0xcd   :  { %v1236_v0 = vpop.xlane.xlu1 %183  ;;  %v350_v43 = vrot.slane %v212_v11, %v1256_v19 }
  0xce   :  { %v1244_v53 = vpop.xlane.xlu0 %135  ;;  %v229_v23 = vmul.f32 0.00390625, %v1236_v0  ;;  %v338_v0 = vsel %vm337_vm6, %v336_v30, %v331_v40  ;;  %v445_v51 = vsel %vm351_vm8, %v444_v25, %v440_v7  ;;  %v627_v7 = vsub.s32 1, %v1223_v31 }
  0xcf   :  { %v213_v28 = vmul.f32 0.00390625, %v1244_v53  ;;  %v345_v1 = vsel %vm344_vm7, %v343_v54, %v338_v0 }
  0xd0   :  { %v449_v53 = vrot.slane %v229_v23, %v1259_v18 }
  0xd1   :  { %v187_v6 = vpop.xlane.xlu1 %186  ;;  %v357_v16 = vrot.slane %v213_v28, %v1259_v18  ;;  %v352_v18 = vsel %vm351_vm8, %v350_v43, %v345_v1 }
  0xd2   :  { %v139_v44 = vpop.xlane.xlu0 %138  ;;  %v230_v46 = vmul.f32 0.00390625, %v187_v6  ;;  %v450_v29 = vsel %vm358_vm9, %v449_v53, %v445_v51 }
  0xd3   :  { %v214_v41 = vmul.f32 0.00390625, %v139_v44 }
  0xd4   :  { %v454_v44 = vrot.slane %v230_v46, %v1262_v57 }
  0xd5   :  { %v190_v47 = vpop.xlane.xlu1 %189  ;;  %v364_v22 = vrot.slane %v214_v41, %v1262_v57  ;;  %v359_v57 = vsel %vm358_vm9, %v357_v16, %v352_v18 }
  0xd6   :  { %v142_v60 = vpop.xlane.xlu0 %141  ;;  %v231_v35 = vmul.f32 0.00390625, %v190_v47 }
  0xd7   :  { %v215_v48 = vmul.f32 0.00390625, %v142_v60  ;;  %v366_v30 = vsel %vm365_vm10, %v364_v22, %v359_v57 }
  0xd8   :  { %v459_v60 = vrot.slane %v231_v35, %v1265_v63 }
  0xd9   :  { %v193_v42 = vpop.xlane.xlu1 %192  ;;  %v371_v50 = vrot.slane %v215_v48, %v1265_v63 }
  0xda   :  { %v145_v24 = vpop.xlane.xlu0 %144  ;;  %v232_v56 = vmul.f32 0.00390625, %v193_v42 }
  0xdb   :  { %v216_v6 = vmul.f32 0.00390625, %v145_v24  ;;  %v455_v24 = vsel %vm365_vm10, %v454_v44, %v450_v29  ;;  %v1530_v29 = vld [vmem:[#allocation24_spill] sm:$0xff] }
  0xdc   :  { %v464_v42 = vrot.slane %v232_v56, %v1268_v12  ;;  %v460_v52 = vsel %vm372_vm11, %v459_v60, %v455_v24  ;;  %v1532_v24 = vld [vmem:[#allocation34_spill] sm:$0xff] }
  0xdd   :  { %v196_v37 = vpop.xlane.xlu1 %195  ;;  %v378_v33 = vrot.slane %v216_v6, %v1268_v12  ;;  %v373_v12 = vsel %vm372_vm11, %v371_v50, %v366_v30  ;;  %v1535_v30 = vld [vmem:[#allocation41_spill] sm:$0xff] }
  0xde   :  { %v148_v34 = vpop.xlane.xlu0 %147  ;;  %v233_v61 = vmul.f32 0.00390625, %v196_v37  ;;  %v465_v23 = vsel %vm379_vm12, %v464_v42, %v460_v52 }
  0xdf   :  { %v217_v47 = vmul.f32 0.00390625, %v148_v34  ;;  %v380_v59 = vsel %vm379_vm12, %v378_v33, %v373_v12  ;;  %v838_v34 = vld [vmem:[%s1423_s2] ss:$0 sm:$0xff]  ;;  %s974_s2 = smov [#allocation7]  }
  0xe0   :  { %v469_v49 = vrot.slane %v233_v61, %v1271_v10  ;;  %s825_s26 = sshll.u32 %s974_s2, 4  ;;  %s826_s26 = int_to_ptr.vmem [resolvable:$true] %s825_s26 }
  0xe1   :  { %v199_v62 = vpop.xlane.xlu1 %198  ;;  %v385_v32 = vrot.slane %v217_v47, %v1271_v10  ;;  %s940_s27 = scalar_lea.vmem %s826_s26, 8192  ;;  %p945_p11 = scmp.lt.s32.totalorder %s826_s26, %s826_s26 }
  0xe2   :  { %v234_v13 = vmul.f32 0.00390625, %v199_v62  ;;  %v151_v19 = vpop.xlane.xlu0 %150  ;;  %v470_v10 = vsel %vm386_vm13, %v469_v49, %v465_v23  ;;  %v1531_v49 = vld [vmem:[#allocation33_spill] sm:$0xff]  ;;  %p941_p10 = scmp.ne.s32.totalorder %s826_s26, %s940_s27  ;;  %p946_p12 = scmp.lt.s32.totalorder %s940_s27, %s940_s27 }
  0xe3   :  { %v218_v58 = vmul.f32 0.00390625, %v151_v19  ;;  %v387_v46 = vsel %vm386_vm13, %v385_v32, %v380_v59  ;;  %v1537_v23 = vld [vmem:[#allocation37_spill] sm:$0xff]  ;;  %v1538_v59 = vld [vmem:[#allocation38_spill] sm:$0xff] }
  0xe4   :  { %v474_v5 = vrot.slane %v234_v13, %v1276_v17  ;;  %p947_p13 = por %p946_p12, %p945_p11 }
  0xe5   :  { %v202_v63 = vpop.xlane.xlu1 %201  ;;  %v392_v3 = vrot.slane %v218_v58, %v1276_v17 }
  0xe6   :  { %v235_v55 = vmul.f32 0.00390625, %v202_v63  ;;  %v154_v11 = vpop.xlane.xlu0 %153  ;;  %v475_v17 = vsel %vm393_vm14, %v474_v5, %v470_v10  ;;  %v1534_v5 = vld [vmem:[#allocation30_spill] sm:$0xff]  ;;  %p948_p0 = pnand %p947_p13, %p941_p10 }
  0xe7   :  { %v219_v40 = vmul.f32 0.00390625, %v154_v11  ;;  %v394_v36 = vsel %vm393_vm14, %v392_v3, %v387_v46  ;;  %v1536_v3 = vld [vmem:[#allocation42_spill] sm:$0xff] }
  0xe8   :  { %v479_v28 = vrot.slane %v235_v55, %v1290_v45 }
  0xe9   :  { %v399_v37 = vrot.slane %v219_v40, %v1290_v45  ;;  %v560_v45 = vsub.s32 0, %v1223_v31 }
  0xea   :  { %v480_v54 = vsel %vm400_vm15, %v479_v28, %v475_v17  ;;  %v1539_v28 = vld [vmem:[#allocation49_spill] sm:$0xff] }
  0xeb   :  { %v401_v41 = vsel %vm400_vm15, %v399_v37, %v394_v36  ;;  %v1540_v37 = vld [vmem:[#allocation50_spill] sm:$0xff] }
  0xec   :  { %v482_v35 = vsel %vm481_vm0, %v480_v54, %v401_v41  ;;  %v1541_v41 = vld [vmem:[#allocation45_spill] sm:$0xff] }
  0xed   :  { %889 = vmatmul.mubr.f32.vlgmr.msra.gmra.mxu0 %v482_v35 }
 0x1ad   :  { %v550_v0 = vpop.f32.mrf.mxu0 }
 0x1ae   :  { %v551_v25 = vadd.f32 %v838_v34, %v550_v0  ;;  %v1542_v34 = vld [vmem:[#allocation46_spill] sm:$0xff] }
 0x1af   :  { %v890_v48 = vpop.f32.mrf.mxu0 }
 0x1b0   :  { %v554_v56 = vadd.f32 3.0, %v551_v25  ;;  %v1543_v25 = vld [vmem:[#allocation57_spill] sm:$0xff] }
 0x1b2   :  { %v555_v43 = vmax.f32 %v554_v56, 0.0  ;;  %v1544_v56 = vld [vmem:[#allocation58_spill] sm:$0xff] }
 0x1b4   :  { %v556_v53 = vmin.f32 %v555_v43, 6.0 }
 0x1b6   :  { %v557_v6 = vmul.f32 0.16666667, %v556_v53 }
 0x1b8   :  { %v561_v61 = vrot.slane %v557_v6, %v560_v45  ;;  %v628_v16 = vrot.slane %v557_v6, %v627_v7  ;;  %v1545_v6 = vld [vmem:[#allocation53_spill] sm:$0xff]  ;;  %v1546_v7 = vld [vmem:[#allocation54_spill] sm:$0xff] }
 0x1ba   :  { %567 = vbcast.lane.b32.xlu1 %v561_v61, 264  ;;  %563 = vbcast.lane.b32.xlu0 %v561_v61, 256 }
 0x1be   :  { %571 = vbcast.lane.b32.xlu1 %v561_v61, 272  ;;  %579 = vbcast.lane.b32.xlu0 %v561_v61, 288 }
 0x1c2   :  { %575 = vbcast.lane.b32.xlu1 %v561_v61, 280  ;;  %587 = vbcast.lane.b32.xlu0 %v561_v61, 304 }
 0x1c6   :  { %583 = vbcast.lane.b32.xlu1 %v561_v61, 296  ;;  %595 = vbcast.lane.b32.xlu0 %v561_v61, 320 }
 0x1ca   :  { %591 = vbcast.lane.b32.xlu1 %v561_v61, 312  ;;  %603 = vbcast.lane.b32.xlu0 %v561_v61, 336 }
 0x1ce   :  { %599 = vbcast.lane.b32.xlu1 %v561_v61, 328  ;;  %611 = vbcast.lane.b32.xlu0 %v561_v61, 352 }
 0x1d2   :  { %607 = vbcast.lane.b32.xlu1 %v561_v61, 344  ;;  %619 = vbcast.lane.b32.xlu0 %v561_v61, 368 }
 0x1d6   :  { %615 = vbcast.lane.b32.xlu1 %v561_v61, 360  ;;  %630 = vbcast.lane.b32.xlu0 %v628_v16, 256 }
 0x1da   :  { %623 = vbcast.lane.b32.xlu1 %v561_v61, 376  ;;  %638 = vbcast.lane.b32.xlu0 %v628_v16, 272 }
 0x1de   :  { %634 = vbcast.lane.b32.xlu1 %v628_v16, 264  ;;  %646 = vbcast.lane.b32.xlu0 %v628_v16, 288 }
 0x1e2   :  { %642 = vbcast.lane.b32.xlu1 %v628_v16, 280  ;;  %654 = vbcast.lane.b32.xlu0 %v628_v16, 304 }
 0x1e6   :  { %650 = vbcast.lane.b32.xlu1 %v628_v16, 296  ;;  %662 = vbcast.lane.b32.xlu0 %v628_v16, 320 }
 0x1ea   :  { %658 = vbcast.lane.b32.xlu1 %v628_v16, 312  ;;  %670 = vbcast.lane.b32.xlu0 %v628_v16, 336 }
 0x1ee   :  { %666 = vbcast.lane.b32.xlu1 %v628_v16, 328  ;;  %678 = vbcast.lane.b32.xlu0 %v628_v16, 352 }
 0x1f2   :  { %674 = vbcast.lane.b32.xlu1 %v628_v16, 344  ;;  %686 = vbcast.lane.b32.xlu0 %v628_v16, 368 }
 0x1f6   :  { %682 = vbcast.lane.b32.xlu1 %v628_v16, 360 }
 0x1fa   :  { %690 = vbcast.lane.b32.xlu1 %v628_v16, 376 }
 0x22c   :  { %v568_v31 = vpop.permute.xlu1 %567  ;;  %v564_v44 = vpop.permute.xlu0 %563 }
 0x22d   :  { %v694_v47 = vmul.f32 %v568_v31, %v1020_v8  ;;  %v695_v62 = vmul.f32 %v568_v31, %v1022_v9  ;;  %v692_v1 = vmul.f32 %v564_v44, %v1008_v2  ;;  %v693_v22 = vmul.f32 %v564_v44, %v1012_v4  ;;  %v1547_v31 = vld [vmem:[#allocation11_spill] sm:$0xff] }
 0x22f   :  { %758 = vst [vmem:[#allocation7 + $0x10] sm:$0xff] %v694_v47  ;;  %759 = vst [vmem:[#allocation7 + $0x18] sm:$0xff] %v695_v62  ;;  %v1548_v47 = vld [vmem:[#allocation12_spill] sm:$0xff] }
 0x230   :  { %756 = vst [vmem:[#allocation7] sm:$0xff] %v692_v1  ;;  %757 = vst [vmem:[#allocation7 + $0x8] sm:$0xff] %v693_v22  ;;  %v572_v60 = vpop.permute.xlu1 %571  ;;  %v580_v13 = vpop.permute.xlu0 %579 }
 0x231   :  { %v696_v19 = vmul.f32 %v572_v60, %v1032_v14  ;;  %v697_v51 = vmul.f32 %v572_v60, %v1034_v15  ;;  %v700_v50 = vmul.f32 %v580_v13, %v1056_v26  ;;  %v701_v8 = vmul.f32 %v580_v13, %v1058_v27  ;;  %v1529_v27 = vld [vmem:[#allocation23_spill] sm:$0xff]  ;;  %v1549_v60 = vld [vmem:[#allocation61_spill] sm:$0xff] }
 0x233   :  { %760 = vst [vmem:[#allocation7 + $0x20] sm:$0xff] %v696_v19  ;;  %761 = vst [vmem:[#allocation7 + $0x28] sm:$0xff] %v697_v51  ;;  %v1550_v19 = vld [vmem:[#allocation62_spill] sm:$0xff] }
 0x234   :  { %764 = vst [vmem:[#allocation7 + $0x40] sm:$0xff] %v700_v50  ;;  %765 = vst [vmem:[#allocation7 + $0x48] sm:$0xff] %v701_v8  ;;  %v576_v2 = vpop.permute.xlu1 %575  ;;  %v588_v4 = vpop.permute.xlu0 %587  ;;  %v1551_v50 = vld [vmem:[#allocation15_spill] sm:$0xff] }
 0x235   :  { %v698_v9 = vmul.f32 %v576_v2, %v1044_v20  ;;  %v699_v42 = vmul.f32 %v576_v2, %v1046_v21  ;;  %v704_v58 = vmul.f32 %v588_v4, %v1080_v38  ;;  %v705_v14 = vmul.f32 %v588_v4, %v1082_v39  ;;  %v1533_v39 = vld [vmem:[#allocation29_spill] sm:$0xff]  ;;  %v1552_v2 = vld [vmem:[#allocation16_spill] sm:$0xff] }
 0x237   :  { %762 = vst [vmem:[#allocation7 + $0x30] sm:$0xff] %v698_v9  ;;  %763 = vst [vmem:[#allocation7 + $0x38] sm:$0xff] %v699_v42 }
 0x238   :  { %768 = vst [vmem:[#allocation7 + $0x60] sm:$0xff] %v704_v58  ;;  %769 = vst [vmem:[#allocation7 + $0x68] sm:$0xff] %v705_v14  ;;  %v584_v15 = vpop.permute.xlu1 %583  ;;  %v596_v26 = vpop.permute.xlu0 %595  ;;  %v1553_v58 = vld [vmem:[#allocation13_spill] sm:$0xff] }
 0x239   :  { %v702_v18 = vmul.f32 %v584_v15, %v1529_v27  ;;  %v703_v33 = vmul.f32 %v584_v15, %v1530_v29  ;;  %v708_v57 = vmul.f32 %v596_v26, %v1531_v49  ;;  %v709_v20 = vmul.f32 %v596_v26, %v1532_v24  ;;  %v1554_v15 = vld [vmem:[#allocation14_spill] sm:$0xff]  ;;  %v1555_v27 = vld [vmem:[#allocation19_spill] sm:$0xff]  ;;  %v1556_v29 = vld [vmem:[#allocation20_spill] sm:$0xff] }
 0x23a   :  { %v1557_v24 = vld [vmem:[#allocation17_spill] sm:$0xff] }
 0x23b   :  { %766 = vst [vmem:[#allocation7 + $0x50] sm:$0xff] %v702_v18  ;;  %767 = vst [vmem:[#allocation7 + $0x58] sm:$0xff] %v703_v33 }
 0x23c   :  { %772 = vst [vmem:[#allocation7 + $0x80] sm:$0xff] %v708_v57  ;;  %773 = vst [vmem:[#allocation7 + $0x88] sm:$0xff] %v709_v20  ;;  %v592_v21 = vpop.permute.xlu1 %591  ;;  %v604_v38 = vpop.permute.xlu0 %603 }
 0x23d   :  { %v706_v32 = vmul.f32 %v592_v21, %v1533_v39  ;;  %v707_v63 = vmul.f32 %v592_v21, %v1534_v5  ;;  %v712_v52 = vmul.f32 %v604_v38, %v1535_v30  ;;  %v713_v55 = vmul.f32 %v604_v38, %v1536_v3  ;;  %v1558_v21 = vld [vmem:[#allocation18_spill] sm:$0xff]  ;;  %v1559_v39 = vld [vmem:[#allocation25_spill] sm:$0xff] }
 0x23e   :  { %v1560_v5 = vld [vmem:[#allocation26_spill] sm:$0xff]  ;;  %v1561_v3 = vld [vmem:[#allocation21_spill] sm:$0xff] }
 0x23f   :  { %770 = vst [vmem:[#allocation7 + $0x70] sm:$0xff] %v706_v32  ;;  %771 = vst [vmem:[#allocation7 + $0x78] sm:$0xff] %v707_v63 }
 0x240   :  { %776 = vst [vmem:[#allocation7 + $0xa0] sm:$0xff] %v712_v52  ;;  %777 = vst [vmem:[#allocation7 + $0xa8] sm:$0xff] %v713_v55  ;;  %v600_v11 = vpop.permute.xlu1 %599  ;;  %v612_v12 = vpop.permute.xlu0 %611 }
 0x241   :  { %v710_v40 = vmul.f32 %v600_v11, %v1537_v23  ;;  %v711_v10 = vmul.f32 %v600_v11, %v1538_v59  ;;  %v716_v46 = vmul.f32 %v612_v12, %v1539_v28  ;;  %v717_v17 = vmul.f32 %v612_v12, %v1540_v37  ;;  %v1562_v11 = vld [vmem:[#allocation22_spill] sm:$0xff]  ;;  %v1563_v23 = vld [vmem:[#allocation31_spill] sm:$0xff]  ;;  %v1564_v59 = vld [vmem:[#allocation32_spill] sm:$0xff] }
 0x242   :  { %v1565_v37 = vld [vmem:[#allocation27_spill] sm:$0xff] }
 0x243   :  { %774 = vst [vmem:[#allocation7 + $0x90] sm:$0xff] %v710_v40  ;;  %775 = vst [vmem:[#allocation7 + $0x98] sm:$0xff] %v711_v10 }
 0x244   :  { %780 = vst [vmem:[#allocation7 + $0xc0] sm:$0xff] %v716_v46  ;;  %781 = vst [vmem:[#allocation7 + $0xc8] sm:$0xff] %v717_v17  ;;  %v608_v36 = vpop.permute.xlu1 %607  ;;  %v620_v54 = vpop.permute.xlu0 %619 }
 0x245   :  { %v714_v35 = vmul.f32 %v608_v36, %v1541_v41  ;;  %v715_v0 = vmul.f32 %v608_v36, %v1542_v34  ;;  %v720_v48 = vmul.f32 %v620_v54, %v1543_v25  ;;  %v721_v43 = vmul.f32 %v620_v54, %v1544_v56  ;;  %v1566_v36 = vld [vmem:[#allocation28_spill] sm:$0xff]  ;;  %v1567_v41 = vld [vmem:[#allocation39_spill] sm:$0xff] }
 0x246   :  { %v1568_v34 = vld [vmem:[#allocation40_spill] sm:$0xff]  ;;  %v1569_v56 = vld [vmem:[#allocation35_spill] sm:$0xff] }
 0x247   :  { %778 = vst [vmem:[#allocation7 + $0xb0] sm:$0xff] %v714_v35  ;;  %779 = vst [vmem:[#allocation7 + $0xb8] sm:$0xff] %v715_v0 }
 0x248   :  { %784 = vst [vmem:[#allocation7 + $0xe0] sm:$0xff] %v720_v48  ;;  %785 = vst [vmem:[#allocation7 + $0xe8] sm:$0xff] %v721_v43  ;;  %v616_v53 = vpop.permute.xlu1 %615  ;;  %v631_v45 = vpop.permute.xlu0 %630 }
 0x249   :  { %v718_v61 = vmul.f32 %v616_v53, %v1545_v6  ;;  %v719_v16 = vmul.f32 %v616_v53, %v1546_v7  ;;  %v724_v44 = vmul.f32 %v631_v45, %v1547_v31  ;;  %v725_v62 = vmul.f32 %v631_v45, %v1548_v47  ;;  %v1570_v53 = vld [vmem:[#allocation36_spill] sm:$0xff]  ;;  %v1571_v6 = vld [vmem:[#allocation47_spill] sm:$0xff] }
 0x24a   :  { %v1572_v7 = vld [vmem:[#allocation48_spill] sm:$0xff]  ;;  %v1573_v47 = vld [vmem:[#allocation43_spill] sm:$0xff] }
 0x24b   :  { %782 = vst [vmem:[#allocation7 + $0xd0] sm:$0xff] %v718_v61  ;;  %783 = vst [vmem:[#allocation7 + $0xd8] sm:$0xff] %v719_v16 }
 0x24c   :  { %788 = vst [vmem:[#allocation7 + $0x100] sm:$0xff] %v724_v44  ;;  %789 = vst [vmem:[#allocation7 + $0x108] sm:$0xff] %v725_v62  ;;  %v624_v1 = vpop.permute.xlu1 %623  ;;  %v639_v22 = vpop.permute.xlu0 %638 }
 0x24d   :  { %v722_v13 = vmul.f32 %v624_v1, %v1549_v60  ;;  %v723_v51 = vmul.f32 %v624_v1, %v1550_v19  ;;  %v728_v8 = vmul.f32 %v639_v22, %v1551_v50  ;;  %v729_v4 = vmul.f32 %v639_v22, %v1552_v2  ;;  %v1574_v1 = vld [vmem:[#allocation44_spill] sm:$0xff]  ;;  %v1575_v60 = vld [vmem:[#allocation55_spill] sm:$0xff] }
 0x24e   :  { %v1576_v19 = vld [vmem:[#allocation56_spill] sm:$0xff] }
 0x24f   :  { %786 = vst [vmem:[#allocation7 + $0xf0] sm:$0xff] %v722_v13  ;;  %787 = vst [vmem:[#allocation7 + $0xf8] sm:$0xff] %v723_v51 }
 0x250   :  { %792 = vst [vmem:[#allocation7 + $0x120] sm:$0xff] %v728_v8  ;;  %793 = vst [vmem:[#allocation7 + $0x128] sm:$0xff] %v729_v4  ;;  %v635_v9 = vpop.permute.xlu1 %634  ;;  %v647_v42 = vpop.permute.xlu0 %646  ;;  %v1577_v8 = vld [vmem:[#allocation51_spill] sm:$0xff]  ;;  %v1578_v4 = vld [vmem:[#allocation52_spill] sm:$0xff] }
 0x251   :  { %v726_v14 = vmul.f32 %v635_v9, %v1553_v58  ;;  %v727_v26 = vmul.f32 %v635_v9, %v1554_v15  ;;  %v732_v18 = vmul.f32 %v647_v42, %v1555_v27  ;;  %v733_v33 = vmul.f32 %v647_v42, %v1556_v29  ;;  %v1579_v58 = vld [vmem:[#allocation59_spill] sm:$0xff]  ;;  %v1580_v15 = vld [vmem:[#allocation60_spill] sm:$0xff] }
 0x253   :  { %790 = vst [vmem:[#allocation7 + $0x110] sm:$0xff] %v726_v14  ;;  %791 = vst [vmem:[#allocation7 + $0x118] sm:$0xff] %v727_v26 }
 0x254   :  { %796 = vst [vmem:[#allocation7 + $0x140] sm:$0xff] %v732_v18  ;;  %797 = vst [vmem:[#allocation7 + $0x148] sm:$0xff] %v733_v33  ;;  %v643_v49 = vpop.permute.xlu1 %642  ;;  %v655_v57 = vpop.permute.xlu0 %654 }
 0x255   :  { %v730_v20 = vmul.f32 %v643_v49, %v1557_v24  ;;  %v731_v38 = vmul.f32 %v643_v49, %v1558_v21  ;;  %v736_v32 = vmul.f32 %v655_v57, %v1559_v39  ;;  %v737_v63 = vmul.f32 %v655_v57, %v1560_v5 }
 0x257   :  { %794 = vst [vmem:[#allocation7 + $0x130] sm:$0xff] %v730_v20  ;;  %795 = vst [vmem:[#allocation7 + $0x138] sm:$0xff] %v731_v38 }
 0x258   :  { %800 = vst [vmem:[#allocation7 + $0x160] sm:$0xff] %v736_v32  ;;  %801 = vst [vmem:[#allocation7 + $0x168] sm:$0xff] %v737_v63  ;;  %v651_v30 = vpop.permute.xlu1 %650  ;;  %v663_v52 = vpop.permute.xlu0 %662 }
 0x259   :  { %v734_v55 = vmul.f32 %v651_v30, %v1561_v3  ;;  %v735_v12 = vmul.f32 %v651_v30, %v1562_v11  ;;  %v740_v40 = vmul.f32 %v663_v52, %v1563_v23  ;;  %v741_v10 = vmul.f32 %v663_v52, %v1564_v59 }
 0x25b   :  { %798 = vst [vmem:[#allocation7 + $0x150] sm:$0xff] %v734_v55  ;;  %799 = vst [vmem:[#allocation7 + $0x158] sm:$0xff] %v735_v12 }
 0x25c   :  { %804 = vst [vmem:[#allocation7 + $0x180] sm:$0xff] %v740_v40  ;;  %805 = vst [vmem:[#allocation7 + $0x188] sm:$0xff] %v741_v10  ;;  %v659_v28 = vpop.permute.xlu1 %658  ;;  %v671_v46 = vpop.permute.xlu0 %670 }
 0x25d   :  { %v738_v17 = vmul.f32 %v659_v28, %v1565_v37  ;;  %v739_v54 = vmul.f32 %v659_v28, %v1566_v36  ;;  %v744_v35 = vmul.f32 %v671_v46, %v1567_v41  ;;  %v745_v0 = vmul.f32 %v671_v46, %v1568_v34 }
 0x25f   :  { %802 = vst [vmem:[#allocation7 + $0x170] sm:$0xff] %v738_v17  ;;  %803 = vst [vmem:[#allocation7 + $0x178] sm:$0xff] %v739_v54 }
 0x260   :  { %808 = vst [vmem:[#allocation7 + $0x1a0] sm:$0xff] %v744_v35  ;;  %809 = vst [vmem:[#allocation7 + $0x1a8] sm:$0xff] %v745_v0  ;;  %v667_v25 = vpop.permute.xlu1 %666  ;;  %v679_v48 = vpop.permute.xlu0 %678 }
 0x261   :  { %v742_v43 = vmul.f32 %v667_v25, %v1569_v56  ;;  %v743_v45 = vmul.f32 %v667_v25, %v1570_v53  ;;  %v748_v61 = vmul.f32 %v679_v48, %v1571_v6  ;;  %v749_v16 = vmul.f32 %v679_v48, %v1572_v7 }
 0x263   :  { %806 = vst [vmem:[#allocation7 + $0x190] sm:$0xff] %v742_v43  ;;  %807 = vst [vmem:[#allocation7 + $0x198] sm:$0xff] %v743_v45 }
 0x264   :  { %812 = vst [vmem:[#allocation7 + $0x1c0] sm:$0xff] %v748_v61  ;;  %813 = vst [vmem:[#allocation7 + $0x1c8] sm:$0xff] %v749_v16  ;;  %v675_v31 = vpop.permute.xlu1 %674  ;;  %v687_v44 = vpop.permute.xlu0 %686 }
 0x265   :  { %v746_v62 = vmul.f32 %v675_v31, %v1573_v47  ;;  %v747_v22 = vmul.f32 %v675_v31, %v1574_v1  ;;  %v752_v13 = vmul.f32 %v687_v44, %v1575_v60  ;;  %v753_v51 = vmul.f32 %v687_v44, %v1576_v19 }
 0x267   :  { %810 = vst [vmem:[#allocation7 + $0x1b0] sm:$0xff] %v746_v62  ;;  %811 = vst [vmem:[#allocation7 + $0x1b8] sm:$0xff] %v747_v22 }
 0x268   :  { %816 = vst [vmem:[#allocation7 + $0x1e0] sm:$0xff] %v752_v13  ;;  %817 = vst [vmem:[#allocation7 + $0x1e8] sm:$0xff] %v753_v51  ;;  %v683_v50 = vpop.permute.xlu1 %682 }
 0x269   :  { %v750_v2 = vmul.f32 %v683_v50, %v1577_v8  ;;  %v751_v9 = vmul.f32 %v683_v50, %v1578_v4 }
 0x26b   :  { %814 = vst [vmem:[#allocation7 + $0x1d0] sm:$0xff] %v750_v2  ;;  %815 = vst [vmem:[#allocation7 + $0x1d8] sm:$0xff] %v751_v9 }
 0x26c   :  { %v691_v42 = vpop.permute.xlu1 %690 }
 0x26d   :  { %v754_v14 = vmul.f32 %v691_v42, %v1579_v58  ;;  %v755_v26 = vmul.f32 %v691_v42, %v1580_v15 }
 0x26f   :  { %818 = vst [vmem:[#allocation7 + $0x1f0] sm:$0xff] %v754_v14  ;;  %819 = vst [vmem:[#allocation7 + $0x1f8] sm:$0xff] %v755_v26 }
 0x270   :  { %951 = shalt.err (!%p948_p0)
}
 0x271   :  { %831 = dma.vmem_to_hbm [thread:$0]  %s826_s26, 8192, %s1424_s3, [#allocation4], %s967_s15, %s967_s15, %s968_s16  }
 0x272   :  { %964 = dma.done.wait [#allocation4], 8192  }
 0x273   :  { %965 = vsyncadd [#allocation4], 4294959104 }
 0x274   :  { %835 = vsyncpa [#allocation3], 1 }
 0x275   :  { %836 = vsyncpa [#allocation6], 1 }
 0x276   :  { %837 = vsyncpa [#allocation4], 1 }

</bundles_post_ra>
